<compile_context>
chip_gen: v7x
topology: tpu7x:2x2x1
jax: 0.10.0
libtpu: 0.0.40
codegen_flags: <defaults>
</compile_context>

<pallas_src>
import jax
import jax.numpy as jnp
from jax.experimental import pallas as pl
from jax.experimental.pallas import tpu as pltpu


def _round_up(x: int, m: int) -> int:
    return (x + m - 1) // m * m


def _affine_kernel(p_ref, x_ref, o_ref):
    # p_ref: (3,) f32 SMEM resident = [w0, w1, bias] of the collapsed affine map.
    # x_ref: (2, tm, 128) f32 VMEM tile -- features on the leading axis, batch
    #        rows on sublanes, batch on the 128-lane axis (dense vregs).
    # o_ref: (tm, 128) f32 VMEM tile -- dense (8,128) vregs, unmasked vst.
    w0 = p_ref[0]
    w1 = p_ref[1]
    bias = p_ref[2]
    x = x_ref[...]                                 # (2, tm, 128)
    o_ref[...] = w0 * x[0] + w1 * x[1] + bias      # pure VPU; no MXU needed


def _fuse_affine(params):
    """Collapse the activation-free 3-layer MLP into one affine map (trace time)."""
    w1, b1, w2, b2, w3, b3 = params
    W = w1 @ w2 @ w3                     # (2, 1)
    b = (b1 @ w2 + b2) @ w3 + b3         # (1, 1)
    return W, b


def _choose_tile_rows(r_min: int, tile_rows_max: int) -> int:
    """Pick the row-tile (multiple of 8).

    Prefer ~8 grid steps (amortises pipeline warm-up and lets v7x shard tiles
    across its 2 TensorCores), but never shrink a tile below ~512 rows
    (64K lanes ~= 768 KiB of HBM traffic per step) just to get more steps, and
    never exceed the VMEM-safe cap `tile_rows_max`.
    """
    tm = _round_up(pl.cdiv(r_min, 8), 8)                        # ~8 grid steps
    tm = max(tm, min(512, _round_up(pl.cdiv(r_min, 2), 8)))     # big-tile floor (>=2 steps)
    tm = min(tm, _round_up(tile_rows_max, 8))                   # VMEM cap
    return max(tm, 8)


def circle_model2_forward(x, params, *, tile_rows: int = 4096,
                          min_pallas_batch: int = 1 << 15,
                          feature_major: bool = False):
    """y = layer3(layer2(layer1(x))) for CircleModel2 (PyTorch semantics).

    x: (N, 2) float array, or (2, N) if feature_major=True (preferred when the
       producer can emit the feature-major layout -- skips the wrapper
       transpose copy entirely).
    Returns (N, 1) float32.

    Weights are stored pre-transposed as (in, out), so each layer is
    x @ W + b == PyTorch's x @ W_pt.T + b.  With no activations the three
    layers collapse exactly into one affine map, computed at trace time.
    """
    W, b = _fuse_affine(params)
    n = x.shape[1] if feature_major else x.shape[0]

    # Small batches: a fused XLA affine is already at roofline; pallas_call
    # fixed overhead + layout plumbing would dominate.  (Pass min_pallas_batch=0
    # to force the Pallas path.)
    if n < min_pallas_batch:
        xf = (x.T if feature_major else x).astype(jnp.float32)
        return (xf @ W + b).astype(jnp.float32)

    p = jnp.concatenate([W[:, 0], b[0]]).astype(jnp.float32)    # (3,) [w0, w1, bias]

    r_min = pl.cdiv(n, 128)
    tm = _choose_tile_rows(r_min, tile_rows)
    rows = _round_up(r_min, tm)
    n_pad = rows * 128

    # Layout plumbing (kept minimal): transpose only if the caller could not
    # supply feature-major data, pad with jnp.pad, then contiguity-preserving
    # reshape to the sublane/lane-dense 3-D layout.
    xt = (x if feature_major else x.T).astype(jnp.float32)      # (2, N)
    xt = jnp.pad(xt, ((0, 0), (0, n_pad - n)))                  # (2, n_pad)
    xt = xt.reshape(2, rows, 128)                               # free reshape

    out = pl.pallas_call(
        _affine_kernel,
        out_shape=jax.ShapeDtypeStruct((rows, 128), jnp.float32),
        grid=(rows // tm,),
        in_specs=[
            # fused scalar params: whole (3,) array resident in SMEM
            pl.BlockSpec(memory_space=pltpu.MemorySpace.SMEM),
            # activations: dense (2, tm, 128) tiles, auto double-buffered
            pl.BlockSpec((2, tm, 128), lambda i: (0, i, 0)),
        ],
        # dense (tm, 128) output tiles -> full (8,128) vregs, unmasked vst
        out_specs=pl.BlockSpec((tm, 128), lambda i: (i, 0)),
        compiler_params=pltpu.CompilerParams(
            dimension_semantics=("parallel",),   # shard row-tiles across TCs on v7x
        ),
    )(p, xt)

    # Back to the PyTorch output layout (N, 1).  The reshape is free; the slice
    # drops the padded rows (which hold `bias`, never exposed to the caller).
    # TODO(synk): for a fully fused pipeline, return the padded (rows, 128)
    # lane-dense buffer and let the consumer slice, avoiding this copy.
    return out.reshape(n_pad)[:n].reshape(n, 1)


def init_params(key):
    """Deterministic init mimicking nn.Linear's U(-1/sqrt(fan_in), 1/sqrt(fan_in))."""
    def linear(key, fan_in, fan_out):
        kw, kb = jax.random.split(key)
        bound = 1.0 / jnp.sqrt(jnp.float32(fan_in))
        # stored as (in, out) == PyTorch weight transposed
        w = jax.random.uniform(kw, (fan_in, fan_out), jnp.float32, -bound, bound)
        b = jax.random.uniform(kb, (1, fan_out), jnp.float32, -bound, bound)
        return w, b

    k1, k2, k3 = jax.random.split(key, 3)
    w1, b1 = linear(k1, 2, 10)    # layer1: Linear(2, 10)
    w2, b2 = linear(k2, 10, 10)   # layer2: Linear(10, 10)
    w3, b3 = linear(k3, 10, 1)    # layer3: Linear(10, 1)
    return (w1, b1, w2, b2, w3, b3)


if __name__ == "__main__":
    key = jax.random.PRNGKey(0)
    kx, kp = jax.random.split(key)

    params = init_params(kp)
    w1, b1, w2, b2, w3, b3 = params

    def ref_fwd(x):
        return ((x @ w1 + b1) @ w2 + b2) @ w3 + b3

    # Small batch consistent with the circle-classification data: (N, 2) f32.
    # Force the Pallas path (min_pallas_batch=0) so the kernel runs at least once.
    batch = 8
    x = jax.random.normal(kx, (batch, 2), jnp.float32)
    out = jax.block_until_ready(circle_model2_forward(x, params, min_pallas_batch=0))
    assert out.shape == (batch, 1)
    assert jnp.allclose(out, ref_fwd(x), atol=1e-5, rtol=1e-5)

    # Multi-tile + padding path (grid > 1 on the row axis).
    x_big = jax.random.normal(kx, (5000, 2), jnp.float32)
    out_big = jax.block_until_ready(
        circle_model2_forward(x_big, params, tile_rows=8, min_pallas_batch=0))
    assert out_big.shape == (5000, 1)
    assert jnp.allclose(out_big, ref_fwd(x_big), atol=1e-5, rtol=1e-5)

    # Feature-major (2, N) fast path: no wrapper transpose.
    out_fm = jax.block_until_ready(
        circle_model2_forward(x_big.T, params, tile_rows=8, min_pallas_batch=0,
                              feature_major=True))
    assert jnp.allclose(out_fm, ref_fwd(x_big), atol=1e-5, rtol=1e-5)

    # Small-batch XLA bypass (default threshold): no Pallas, same answer.
    out_small = jax.block_until_ready(circle_model2_forward(x, params))
    assert jnp.allclose(out_small, ref_fwd(x), atol=1e-5, rtol=1e-5)

    print("KERNEL_OK")
</pallas_src>

<mosaic_0001>
module attributes {stable_mosaic.version = 11 : i64} {
  func.func @_affine_kernel(%arg0: i32, %arg1: memref<3xf32, #tpu.memory_space<smem>>, %arg2: memref<2x8x128xf32, #tpu.memory_space<vmem>>, %arg3: memref<8x128xf32, #tpu.memory_space<vmem>>) attributes {dimension_semantics = [#tpu.dimension_semantics<parallel>], iteration_bounds = array<i64: 1>, scalar_prefetch = 0 : i64, scratch_operands = 0 : i64, tpu.core_type = #tpu.core_type<tc>, window_params = [{transform_indices = @transform_0, window_bounds = array<i64: 3>}, {transform_indices = @transform_1, window_bounds = array<i64: 2, 8, 128>}, {transform_indices = @transform_2, window_bounds = array<i64: 8, 128>}]} {
    %c0 = arith.constant 0 : index
    %0 = memref.load %arg1[%c0] : memref<3xf32, #tpu.memory_space<smem>>
    %c1 = arith.constant 1 : index
    %1 = memref.load %arg1[%c1] : memref<3xf32, #tpu.memory_space<smem>>
    %c2 = arith.constant 2 : index
    %2 = memref.load %arg1[%c2] : memref<3xf32, #tpu.memory_space<smem>>
    %c0_0 = arith.constant 0 : index
    %c0_1 = arith.constant 0 : index
    %c0_2 = arith.constant 0 : index
    %3 = vector.load %arg2[%c0_0, %c0_1, %c0_2] : memref<2x8x128xf32, #tpu.memory_space<vmem>>, vector<2x8x128xf32>
    %4 = vector.extract_strided_slice %3 {offsets = [0, 0, 0], sizes = [1, 8, 128], strides = [1, 1, 1]} : vector<2x8x128xf32> to vector<1x8x128xf32>
    %5 = vector.shape_cast %4 : vector<1x8x128xf32> to vector<8x128xf32>
    %6 = vector.broadcast %0 : f32 to vector<8x128xf32>
    %7 = arith.mulf %6, %5 : vector<8x128xf32>
    %8 = vector.extract_strided_slice %3 {offsets = [1, 0, 0], sizes = [1, 8, 128], strides = [1, 1, 1]} : vector<2x8x128xf32> to vector<1x8x128xf32>
    %9 = vector.shape_cast %8 : vector<1x8x128xf32> to vector<8x128xf32>
    %10 = vector.broadcast %1 : f32 to vector<8x128xf32>
    %11 = arith.mulf %10, %9 : vector<8x128xf32>
    %12 = arith.addf %7, %11 : vector<8x128xf32>
    %13 = vector.broadcast %2 : f32 to vector<8x128xf32>
    %14 = arith.addf %12, %13 : vector<8x128xf32>
    %c0_3 = arith.constant 0 : index
    %c0_4 = arith.constant 0 : index
    %15 = vector.load %arg3[%c0_3, %c0_4] : memref<8x128xf32, #tpu.memory_space<vmem>>, vector<8x128xf32>
    tpu.vector_store %arg3[%c0_3, %c0_4], %14 {strides = array<i32>} : memref<8x128xf32, #tpu.memory_space<vmem>>, vector<8x128xf32>,
    return
  }
  func.func @transform_0(%arg0: i32) -> i32 {
    %c0_i32 = arith.constant 0 : i32
    %c0_i32_0 = arith.constant 0 : i32
    return %c0_i32 : i32
  }
  func.func @transform_1(%arg0: i32) -> (i32, i32, i32) {
    %c0_i32 = arith.constant 0 : i32
    %c0_i32_0 = arith.constant 0 : i32
    %c0_i32_1 = arith.constant 0 : i32
    return %c0_i32, %arg0, %c0_i32_0 : i32, i32, i32
  }
  func.func @transform_2(%arg0: i32) -> (i32, i32) {
    %c0_i32 = arith.constant 0 : i32
    %c0_i32_0 = arith.constant 0 : i32
    return %arg0, %c0_i32 : i32, i32
  }
}

</mosaic_0001>

<bundles_post_ra>
// kernel: tpu_custom_call.1
= control target key start
LH: loop header
LB: loop body
LE: loop exit
PB: predicated region body
PF: predicated region fallthrough
CT: control target
= control target key end

     0   :  { %7 = vsyncpa [#allocation5], 0  ;;  %s189_s0 = inlined_call_operand.hbm [shape: f32[3], index: 0, kind: input, shape index: {}]   ;;  %s190_s1 = inlined_call_operand.hbm [shape: f32[2,8,128], index: 1, kind: input, shape index: {}]   ;;  %s191_s2 = inlined_call_operand.hbm [shape: f32[8,128], index: 2, kind: output, shape index: {}]  }
   0x1   :  { %8 = vsyncpa [#allocation3], 0 }
   0x2   :  { %9 = vsyncpa [#allocation4], 0  ;;  %s73_s11 = scalar_lea.hbm %s189_s0, 16 }
   0x3   :  { %p74_p0 = scmp.ne.s32.totalorder %s189_s0, %s73_s11  ;;  %p77_p1 = scmp.lt.u32.totalorder %s73_s11, %s189_s0 }
   0x5   :  { %p79_p2 = pnand %p77_p1, %p74_p0 }
   0x7   :  { %82 = shalt.err (!%p79_p2)
}
   0x8   :  { %s133_s16 = smov [#allocation2]   ;;  %s134_s19 = smov [#allocation6]  }
   0x9   :  { %17 = dma.hbm_to_smem %s189_s0, 16, %s133_s16, [#allocation5]  }
   0xa   :  { %s23_s20 = sshll.u32 %s134_s19, 4  ;;  %s83_s23 = scalar_lea.hbm %s190_s1, 256  ;;  %s24_s20 = int_to_ptr.vmem [resolvable:$true] %s23_s20 }
   0xb   :  { %p84_p3 = scmp.ne.s32.totalorder %s190_s1, %s83_s23  ;;  %p87_p4 = scmp.lt.u32.totalorder %s83_s23, %s190_s1 }
   0xd   :  { %p89_p5 = pnand %p87_p4, %p84_p3 }
   0xf   :  { %92 = shalt.err (!%p89_p5)
}
  0x10   :  { %s93_s28 = scalar_lea.vmem %s24_s20, 256  ;;  %p98_p7 = scmp.lt.s32.totalorder %s24_s20, %s24_s20 }
  0x11   :  { %p94_p6 = scmp.ne.s32.totalorder %s24_s20, %s93_s28  ;;  %p99_p8 = scmp.lt.s32.totalorder %s93_s28, %s93_s28 }
  0x13   :  { %p100_p9 = por %p99_p8, %p98_p7 }
  0x15   :  { %p101_p10 = pnand %p100_p9, %p94_p6 }
  0x17   :  { %104 = shalt.err (!%p101_p10)
}
  0x18   :  { %s135_s0 = smov 128   ;;  %s136_s29 = smov 8  }
  0x19   :  { %29 = dma.hbm_to_vmem [thread:$0]  %s190_s1, 256, %s24_s20, [#allocation3], %s135_s0, %s135_s0, %s136_s29  }
  0x1a   :  { %127 = dma.done.wait [#allocation5], 16  }
  0x1b   :  { %128 = vsyncadd [#allocation5], 4294967280 }
  0x1c   :  { %129 = dma.done.wait [#allocation3], 256  }
  0x1d   :  { %130 = vsyncadd [#allocation3], 4294967040 }
  0x1e   :  { %36 = sfence }
  0x1f   :  { %s37_s4 = sld [smem:[#allocation2]]  ;;  %s66_s5 = sld [smem:[#allocation2 + $0x1]]  ;;  %v40_v0 = vld [vmem:[#allocation6] sm:$0xff]  ;;  %v41_v1 = vld [vmem:[#allocation6 + $0x8] sm:$0xff] }
  0x20   :  { %s67_s6 = sld [smem:[#allocation2 + $0x2]]  ;;  %s137_s7 = smov [#allocation7]  }
  0x21   :  { %s56_s8 = sshll.u32 %s137_s7, 4  ;;  %s57_s8 = int_to_ptr.vmem [resolvable:$true] %s56_s8 }
  0x22   :  { %s105_s1 = scalar_lea.vmem %s57_s8, 128  ;;  %p110_p12 = scmp.lt.s32.totalorder %s57_s8, %s57_s8 }
  0x23   :  { %p106_p11 = scmp.ne.s32.totalorder %s57_s8, %s105_s1  ;;  %p111_p13 = scmp.lt.s32.totalorder %s105_s1, %s105_s1 }
  0x25   :  { %v42_v2 = vstv %s37_s4  ;;  %v44_v3 = vstv %s66_s5  ;;  %p112_p0 = por %p111_p13, %p110_p12 }
  0x26   :  { %v43_v4 = vmul.f32 %v42_v2, %v40_v0  ;;  %v45_v5 = vmul.f32 %v44_v3, %v41_v1  ;;  %v47_v6 = vstv %s67_s6 }
  0x27   :  { %p113_p1 = pnand %p112_p0, %p106_p11 }
  0x28   :  { %v46_v7 = vadd.f32 %v45_v5, %v43_v4 }
  0x2a   :  { %v48_v8 = vadd.f32 %v47_v6, %v46_v7 }
  0x2c   :  { %49 = vst [vmem:[#allocation7] sm:$0xff] %v48_v8 }
  0x2d   :  { %116 = shalt.err (!%p113_p1)
}
  0x2e   :  { %s117_s11 = scalar_lea.hbm %s191_s2, 128 }
  0x2f   :  { %p118_p2 = scmp.ne.s32.totalorder %s191_s2, %s117_s11  ;;  %p121_p3 = scmp.lt.u32.totalorder %s117_s11, %s191_s2 }
  0x31   :  { %p123_p4 = pnand %p121_p3, %p118_p2 }
  0x33   :  { %126 = shalt.err (!%p123_p4)
}
  0x34   :  { %59 = dma.vmem_to_hbm [thread:$0]  %s57_s8, 128, %s191_s2, [#allocation4]  }
  0x35   :  { %131 = dma.done.wait [#allocation4], 128  }
  0x36   :  { %132 = vsyncadd [#allocation4], 4294967168 }
  0x37   :  { %63 = vsyncpa [#allocation3], 1 }
  0x38   :  { %64 = vsyncpa [#allocation4], 1 }
  0x39   :  { %65 = vsyncpa [#allocation5], 1 }

</bundles_post_ra>
